<compile_context>
chip_gen: v5e
topology: v5e:2x2
jax: 0.10.0
libtpu: 0.0.40
codegen_flags: <defaults>
</compile_context>

<pallas_src>
import jax
import jax.numpy as jnp
from jax import lax
from jax.experimental import pallas as pl
from jax.experimental.pallas import tpu as pltpu

EPS = 1e-5


def _round_up(v, m):
    return (v + m - 1) // m * m


# ---------------------------------------------------------------------------
# Fused single-sweep path: each grid step owns (row_tile, N) of whole rows.
# ---------------------------------------------------------------------------
def _make_fused_kernel(n_true):
    inv_n = 1.0 / float(n_true)

    def kernel(x_ref, o_ref):
        x = x_ref[...].astype(jnp.float32)
        # Single-pass stats over the full (true) reduction extent.
        s1 = jnp.sum(x, axis=-1, keepdims=True)
        s2 = jnp.sum(x * x, axis=-1, keepdims=True)
        mean = s1 * inv_n
        var = jnp.maximum(s2 * inv_n - mean * mean, 0.0)  # biased variance
        inv = lax.rsqrt(var + EPS)
        o_ref[...] = ((x - mean) * inv).astype(o_ref.dtype)

    return kernel


# ---------------------------------------------------------------------------
# Large-N fallback: pass 1 accumulates per-row sum / sum-of-squares over
# column chunks (reduction axis last, "arbitrary"); pass 2 normalizes.
# ---------------------------------------------------------------------------
def _make_stats_kernel(n_true, col_tile):
    def kernel(x_ref, s1_ref, s2_ref):
        k = pl.program_id(1)

        @pl.when(k == 0)
        def _():
            s1_ref[...] = jnp.zeros_like(s1_ref)
            s2_ref[...] = jnp.zeros_like(s2_ref)

        # Mask columns beyond the true N (ragged last column block).
        col0 = k * col_tile
        idx = col0 + lax.broadcasted_iota(jnp.int32, x_ref.shape, 1)
        x = jnp.where(idx < n_true, x_ref[...].astype(jnp.float32), 0.0)
        s1_ref[...] += jnp.sum(x, axis=-1, keepdims=True)
        s2_ref[...] += jnp.sum(x * x, axis=-1, keepdims=True)

    return kernel


def _make_norm_kernel(n_true):
    inv_n = 1.0 / float(n_true)

    def kernel(x_ref, s1_ref, s2_ref, o_ref):
        mean = s1_ref[...] * inv_n
        var = jnp.maximum(s2_ref[...] * inv_n - mean * mean, 0.0)
        inv = lax.rsqrt(var + EPS)
        o_ref[...] = ((x_ref[...].astype(jnp.float32) - mean) * inv).astype(
            o_ref.dtype)

    return kernel


def gnorm(x, group_size, *, row_tile=None, col_tile=None,
          vmem_limit_bytes=48 << 20, force_two_pass=False):
    """x: (B, C, H, W) NCHW, C divisible by group_size."""
    B, C, H, W = x.shape
    assert C % group_size == 0
    G = C // group_size               # == width
    N = group_size * H * W            # normalization extent per instance
    R = B * G                         # number of instances

    x2 = x.reshape(R, N)              # contiguous reshape: no HBM copy
    itemsize = jnp.dtype(x.dtype).itemsize
    sub = 16 if itemsize == 2 else 8  # sublane multiple for the dtype

    # Per-block-buffer budget from the scoped VMEM limit: 2 input + 2 output
    # block buffers plus f32 intermediates must fit (also within v7x 64 MiB).
    target_bytes = max(vmem_limit_bytes // 8, 1 << 20)

    use_two_pass = force_two_pass or (sub * N * itemsize > target_bytes)

    if not use_two_pass:
        if row_tile is None:
            row_tile = (target_bytes // (N * itemsize)) // sub * sub
            row_tile = max(sub, row_tile)
            # Prefer >=2 grid blocks when rows allow it (v7x megacore).
            if R > sub:
                row_tile = min(row_tile, max(sub, _round_up((R + 1) // 2, sub)))
            row_tile = min(row_tile, _round_up(R, sub))
        else:
            row_tile = max(sub, _round_up(row_tile, sub))

        out2 = pl.pallas_call(
            _make_fused_kernel(N),
            out_shape=jax.ShapeDtypeStruct((R, N), x.dtype),
            grid=(pl.cdiv(R, row_tile),),
            in_specs=[pl.BlockSpec((row_tile, N), lambda i: (i, 0))],
            out_specs=pl.BlockSpec((row_tile, N), lambda i: (i, 0)),
            compiler_params=pltpu.CompilerParams(
                dimension_semantics=("parallel",),
                vmem_limit_bytes=vmem_limit_bytes),
            # NOTE: input_output_aliases={0: 0} would save the output HBM
            # allocation when the caller can donate x; left off by default.
        )(x2)
        return out2.reshape(B, C, H, W)

    # ---- two-pass fallback (very large group_size*H*W) --------------------
    if col_tile is None:
        col_tile = (target_bytes // (sub * itemsize)) // 128 * 128
        col_tile = max(128, min(col_tile, _round_up(N, 128)))
    else:
        col_tile = max(128, _round_up(col_tile, 128))
    if row_tile is None:
        row_tile = (target_bytes // (col_tile * itemsize)) // sub * sub
        row_tile = max(sub, row_tile)
        if R > sub:
            row_tile = min(row_tile, max(sub, _round_up((R + 1) // 2, sub)))
        row_tile = min(row_tile, _round_up(R, sub))
    else:
        row_tile = max(sub, _round_up(row_tile, sub))

    rgrid = pl.cdiv(R, row_tile)
    cgrid = pl.cdiv(N, col_tile)

    # Pass 1: per-row sum / sum-of-squares accumulated over column chunks.
    s1, s2 = pl.pallas_call(
        _make_stats_kernel(N, col_tile),
        out_shape=(jax.ShapeDtypeStruct((R, 1), jnp.float32),
                   jax.ShapeDtypeStruct((R, 1), jnp.float32)),
        grid=(rgrid, cgrid),
        in_specs=[pl.BlockSpec((row_tile, col_tile), lambda i, k: (i, k))],
        out_specs=(pl.BlockSpec((row_tile, 1), lambda i, k: (i, 0)),
                   pl.BlockSpec((row_tile, 1), lambda i, k: (i, 0))),
        compiler_params=pltpu.CompilerParams(
            dimension_semantics=("parallel", "arbitrary"),
            vmem_limit_bytes=vmem_limit_bytes),
    )(x2)

    # Pass 2: normalize (second streaming read of x).
    out2 = pl.pallas_call(
        _make_norm_kernel(N),
        out_shape=jax.ShapeDtypeStruct((R, N), x.dtype),
        grid=(rgrid, cgrid),
        in_specs=[pl.BlockSpec((row_tile, col_tile), lambda i, k: (i, k)),
                  pl.BlockSpec((row_tile, 1), lambda i, k: (i, 0)),
                  pl.BlockSpec((row_tile, 1), lambda i, k: (i, 0))],
        out_specs=pl.BlockSpec((row_tile, col_tile), lambda i, k: (i, k)),
        compiler_params=pltpu.CompilerParams(
            dimension_semantics=("parallel", "parallel"),
            vmem_limit_bytes=vmem_limit_bytes),
    )(x2, s1, s2)
    return out2.reshape(B, C, H, W)


def gnorm_ref(x, group_size):
    """Pure-JAX reference matching torch InstanceNorm3d defaults."""
    B, C, H, W = x.shape
    G = C // group_size
    xr = x.reshape(B, G, group_size * H * W).astype(jnp.float32)
    mean = jnp.mean(xr, axis=-1, keepdims=True)
    var = jnp.mean((xr - mean) ** 2, axis=-1, keepdims=True)
    y = (xr - mean) / jnp.sqrt(var + EPS)
    return y.reshape(B, C, H, W).astype(x.dtype)


if __name__ == "__main__":
    key = jax.random.PRNGKey(0)
    k1, k2 = jax.random.split(key)

    # InstanceNorm3d(width) defaults: affine=False, track_running_stats=False.
    group_size, H, W = 4, 16, 16

    # Test 1: shipped shape (B=2, width=4) -> fused single-sweep path.
    B, width = 2, 4
    C = width * group_size
    x = jax.random.normal(k1, (B, C, H, W), dtype=jnp.float32) + 0.5
    out = jax.block_until_ready(gnorm(x, group_size))
    ref = gnorm_ref(x, group_size)
    assert out.shape == (B, C, H, W)
    assert jnp.max(jnp.abs(out - ref)) < 2e-4

    # Test 2: ragged row count (R = 15) -> ragged last row block, 2 grid steps.
    B2, width2 = 3, 5
    C2 = width2 * group_size
    x2 = jax.random.normal(k2, (B2, C2, H, W), dtype=jnp.float32)
    out2 = jax.block_until_ready(gnorm(x2, group_size))
    ref2 = gnorm_ref(x2, group_size)
    assert jnp.max(jnp.abs(out2 - ref2)) < 2e-4

    # Test 3: force the large-N two-pass fallback with ragged column blocks
    # (exercises accumulation, pl.when init, and the column mask).
    out3 = jax.block_until_ready(
        gnorm(x, group_size, force_two_pass=True, row_tile=8, col_tile=384))
    assert jnp.max(jnp.abs(out3 - ref)) < 2e-4

    print("KERNEL_OK")
</pallas_src>

<mosaic_0001>
module attributes {stable_mosaic.version = 11 : i64} {
  func.func @kernel(%arg0: i32, %arg1: memref<8x1024xf32, #tpu.memory_space<vmem>>, %arg2: memref<8x1024xf32, #tpu.memory_space<vmem>>) attributes {dimension_semantics = [#tpu.dimension_semantics<parallel>], iteration_bounds = array<i64: 1>, scalar_prefetch = 0 : i64, scratch_operands = 0 : i64, tpu.core_type = #tpu.core_type<tc>, window_params = [{transform_indices = @transform_0, window_bounds = array<i64: 8, 1024>}, {transform_indices = @transform_1, window_bounds = array<i64: 8, 1024>}]} {
    %c0 = arith.constant 0 : index
    %c0_0 = arith.constant 0 : index
    %0 = vector.load %arg1[%c0, %c0_0] : memref<8x1024xf32, #tpu.memory_space<vmem>>, vector<8x1024xf32>
    %cst = arith.constant dense<0.000000e+00> : vector<8xf32>
    %1 = vector.multi_reduction <add>, %0, %cst [1] : vector<8x1024xf32> to vector<8xf32>
    %2 = vector.shape_cast %1 : vector<8xf32> to vector<8x1xf32>
    %3 = arith.mulf %0, %0 : vector<8x1024xf32>
    %cst_1 = arith.constant dense<0.000000e+00> : vector<8xf32>
    %4 = vector.multi_reduction <add>, %3, %cst_1 [1] : vector<8x1024xf32> to vector<8xf32>
    %5 = vector.shape_cast %4 : vector<8xf32> to vector<8x1xf32>
    %cst_2 = arith.constant 9.765625E-4 : f32
    %6 = vector.broadcast %cst_2 : f32 to vector<8x1xf32>
    %7 = arith.mulf %2, %6 : vector<8x1xf32>
    %cst_3 = arith.constant 9.765625E-4 : f32
    %8 = vector.broadcast %cst_3 : f32 to vector<8x1xf32>
    %9 = arith.mulf %5, %8 : vector<8x1xf32>
    %10 = arith.mulf %7, %7 : vector<8x1xf32>
    %11 = arith.subf %9, %10 : vector<8x1xf32>
    %cst_4 = arith.constant 0.000000e+00 : f32
    %12 = vector.broadcast %cst_4 : f32 to vector<8x1xf32>
    %13 = arith.maximumf %11, %12 : vector<8x1xf32>
    %cst_5 = arith.constant 9.99999974E-6 : f32
    %14 = vector.broadcast %cst_5 : f32 to vector<8x1xf32>
    %15 = arith.addf %13, %14 : vector<8x1xf32>
    %16 = math.rsqrt %15 : vector<8x1xf32>
    %17 = vector.broadcast %7 : vector<8x1xf32> to vector<8x1024xf32>
    %18 = arith.subf %0, %17 : vector<8x1024xf32>
    %19 = vector.broadcast %16 : vector<8x1xf32> to vector<8x1024xf32>
    %20 = arith.mulf %18, %19 : vector<8x1024xf32>
    %c0_6 = arith.constant 0 : index
    %c0_7 = arith.constant 0 : index
    %21 = vector.load %arg2[%c0_6, %c0_7] : memref<8x1024xf32, #tpu.memory_space<vmem>>, vector<8x1024xf32>
    tpu.vector_store %arg2[%c0_6, %c0_7], %20 {strides = array<i32>} : memref<8x1024xf32, #tpu.memory_space<vmem>>, vector<8x1024xf32>,
    return
  }
  func.func @transform_0(%arg0: i32) -> (i32, i32) {
    %c0_i32 = arith.constant 0 : i32
    %c0_i32_0 = arith.constant 0 : i32
    return %arg0, %c0_i32 : i32, i32
  }
  func.func @transform_1(%arg0: i32) -> (i32, i32) {
    %c0_i32 = arith.constant 0 : i32
    %c0_i32_0 = arith.constant 0 : i32
    return %arg0, %c0_i32 : i32, i32
  }
}

</mosaic_0001>

<bundles_post_ra>
// kernel: tpu_custom_call.1
= control target key start
LH: loop header
LB: loop body
LE: loop exit
PB: predicated region body
PF: predicated region fallthrough
CT: control target
= control target key end

     0   :  { %6 = vsyncpa [#allocation3], 0  ;;  %s188_s0 = inlined_call_operand.hbm [shape: f32[8,1024], index: 0, kind: input, shape index: {}]   ;;  %s189_s1 = inlined_call_operand.hbm [shape: f32[8,1024], index: 1, kind: output, shape index: {}]  }
   0x1   :  { %7 = vsyncpa [#allocation4], 0  ;;  %s13_s8 = sshll.u32 %s188_s0, 4  ;;  %s170_s9 = smov [#allocation2]   ;;  %s14_s8 = int_to_ptr.hbm [resolvable:$true] %s13_s8 }
   0x2   :  { %s15_s10 = sshll.u32 %s170_s9, 4  ;;  %s16_s10 = int_to_ptr.vmem [resolvable:$true] %s15_s10 }
   0x3   :  { %18 = dma.hbm_to_vmem [thread:$0]  %s14_s8, 1024, %s16_s10, [#allocation3]  }
   0x4   :  { %166 = dma.done.wait [#allocation3], 1024  }
   0x5   :  { %167 = vsyncadd [#allocation3], 4294966272  ;;  %v23_v0 = vld [vmem:[#allocation2] sm:$0xff]  ;;  %v24_v1 = vld [vmem:[#allocation2 + $0x8] sm:$0xff]  ;;  %s171_s0 = smov [#allocation5]   ;;  %s104_s14 = sshll.u32 %s189_s1, 4  ;;  %s105_s14 = int_to_ptr.hbm [resolvable:$true] %s104_s14 }
   0x6   :  { %v25_v2 = vld [vmem:[#allocation2 + $0x10] sm:$0xff]  ;;  %v31_v3 = vadd.f32 %v24_v1, %v23_v0  ;;  %v40_v4 = vmul.f32 %v23_v0, %v23_v0  ;;  %v41_v5 = vmul.f32 %v24_v1, %v24_v1  ;;  %v26_v7 = vld [vmem:[#allocation2 + $0x18] sm:$0xff]  ;;  %v27_v11 = vld [vmem:[#allocation2 + $0x20] sm:$0xff]  ;;  %s102_s11 = sshll.u32 %s171_s0, 4  ;;  %s103_s11 = int_to_ptr.vmem [resolvable:$true] %s102_s11 }
   0x7   :  { %v42_v6 = vmul.f32 %v25_v2, %v25_v2  ;;  %v43_v9 = vmul.f32 %v26_v7, %v26_v7  ;;  %v44_v13 = vmul.f32 %v27_v11, %v27_v11  ;;  %v28_v15 = vld [vmem:[#allocation2 + $0x28] sm:$0xff]  ;;  %v29_v19 = vld [vmem:[#allocation2 + $0x30] sm:$0xff]  ;;  %v30_v22 = vld [vmem:[#allocation2 + $0x38] sm:$0xff] }
   0x8   :  { %v32_v8 = vadd.f32 %v31_v3, %v25_v2  ;;  %v48_v10 = vadd.f32 %v41_v5, %v40_v4  ;;  %v45_v17 = vmul.f32 %v28_v15, %v28_v15  ;;  %v46_v24 = vmul.f32 %v29_v19, %v29_v19 }
   0x9   :  { %v47_v27 = vmul.f32 %v30_v22, %v30_v22 }
   0xa   :  { %v33_v12 = vadd.f32 %v32_v8, %v26_v7  ;;  %v49_v14 = vadd.f32 %v48_v10, %v42_v6 }
   0xc   :  { %v34_v16 = vadd.f32 %v33_v12, %v27_v11  ;;  %v50_v18 = vadd.f32 %v49_v14, %v43_v9 }
   0xe   :  { %v35_v20 = vadd.f32 %v34_v16, %v28_v15  ;;  %v51_v21 = vadd.f32 %v50_v18, %v44_v13 }
  0x10   :  { %v36_v23 = vadd.f32 %v35_v20, %v29_v19  ;;  %v52_v25 = vadd.f32 %v51_v21, %v45_v17 }
  0x12   :  { %v37_v26 = vadd.f32 %v36_v23, %v30_v22  ;;  %v53_v28 = vadd.f32 %v52_v25, %v46_v24 }
  0x14   :  { %38 = vadd.xlane.f32.xlu0 %v37_v26  ;;  %v54_v29 = vadd.f32 %v53_v28, %v47_v27 }
  0x1c   :  { %55 = vadd.xlane.f32.xlu0 %v54_v29 }
  0x87   :  { %v39_v30 = vpop.xlane.xlu0 %38 }
  0x88   :  { %v57_v31 = vmul.f32 0.0009765625, %v39_v30 }
  0x8a   :  { %v59_v33 = vmul.f32 %v57_v31, %v57_v31  ;;  %v73_v44 = vsub.f32 %v23_v0, %v57_v31  ;;  %v74_v45 = vsub.f32 %v24_v1, %v57_v31  ;;  %v75_v46 = vsub.f32 %v25_v2, %v57_v31 }
  0x8b   :  { %v76_v47 = vsub.f32 %v26_v7, %v57_v31  ;;  %v77_v49 = vsub.f32 %v27_v11, %v57_v31  ;;  %v78_v53 = vsub.f32 %v28_v15, %v57_v31  ;;  %v79_v55 = vsub.f32 %v29_v19, %v57_v31 }
  0x8c   :  { %v80_v57 = vsub.f32 %v30_v22, %v57_v31 }
  0x8f   :  { %v56_v32 = vpop.xlane.xlu0 %55 }
  0x90   :  { %v58_v34 = vmul.f32 0.0009765625, %v56_v32 }
  0x92   :  { %v60_v35 = vsub.f32 %v58_v34, %v59_v33 }
  0x94   :  { %v61_v36 = vmax.f32 %v60_v35, 0.0 }
  0x96   :  { %v62_v37 = vadd.f32 1e-05, %v61_v36 }
  0x98   :  { %116 = vrsqrt.f32 %v62_v37  ;;  %vm69_vm1 = vweird.f32 %v62_v37 }
  0x9e   :  { %v117_v38 = vpop.eup %116 }
  0x9f   :  { %v64_v39 = vmul.f32 %v117_v38, %v62_v37  ;;  %vm70_vm0 = vweird.f32 %v117_v38 }
  0xa0   :  { %vm71_vm2 = vmor %vm69_vm1, %vm70_vm0 }
  0xa1   :  { %v65_v40 = vmul.f32 %v117_v38, %v64_v39 }
  0xa3   :  { %v66_v41 = vmul.f32 0.5, %v65_v40 }
  0xa5   :  { %v67_v42 = vsub.f32 1.5, %v66_v41 }
  0xa7   :  { %v68_v43 = vmul.f32 %v117_v38, %v67_v42 }
  0xa9   :  { %v72_v48 = vsel %vm71_vm2, %v117_v38, %v68_v43 }
  0xaa   :  { %v81_v50 = vmul.f32 %v73_v44, %v72_v48  ;;  %v82_v51 = vmul.f32 %v74_v45, %v72_v48  ;;  %v83_v52 = vmul.f32 %v75_v46, %v72_v48  ;;  %v84_v54 = vmul.f32 %v76_v47, %v72_v48 }
  0xab   :  { %v85_v56 = vmul.f32 %v77_v49, %v72_v48  ;;  %v86_v58 = vmul.f32 %v78_v53, %v72_v48  ;;  %v87_v59 = vmul.f32 %v79_v55, %v72_v48  ;;  %v88_v60 = vmul.f32 %v80_v57, %v72_v48 }
  0xac   :  { %89 = vst [vmem:[#allocation5] sm:$0xff] %v81_v50 }
  0xad   :  { %90 = vst [vmem:[#allocation5 + $0x8] sm:$0xff] %v82_v51 }
  0xae   :  { %91 = vst [vmem:[#allocation5 + $0x10] sm:$0xff] %v83_v52 }
  0xaf   :  { %92 = vst [vmem:[#allocation5 + $0x18] sm:$0xff] %v84_v54 }
  0xb0   :  { %93 = vst [vmem:[#allocation5 + $0x20] sm:$0xff] %v85_v56 }
  0xb1   :  { %94 = vst [vmem:[#allocation5 + $0x28] sm:$0xff] %v86_v58 }
  0xb2   :  { %95 = vst [vmem:[#allocation5 + $0x30] sm:$0xff] %v87_v59 }
  0xb3   :  { %96 = vst [vmem:[#allocation5 + $0x38] sm:$0xff] %v88_v60 }
  0xb4   :  { %107 = dma.vmem_to_hbm [thread:$0]  %s103_s11, 1024, %s105_s14, [#allocation4]  }
  0xb5   :  { %168 = dma.done.wait [#allocation4], 1024  }
  0xb6   :  { %169 = vsyncadd [#allocation4], 4294966272 }
  0xb7   :  { %112 = vsyncpa [#allocation3], 1 }
  0xb8   :  { %113 = vsyncpa [#allocation4], 1 }

</bundles_post_ra>
